<compile_context>
chip_gen: v6e
topology: v6e:2x2x1
jax: 0.10.0
libtpu: 0.0.40
codegen_flags: <defaults>
</compile_context>

<pallas_src>
import functools

import jax
import jax.numpy as jnp
from jax.experimental import pallas as pl
from jax.experimental.pallas import tpu as pltpu


def _round_up(n, m):
    return ((n + m - 1) // m) * m


def _generation_params():
    # (target channel tile, VMEM-limit cap).  Safe defaults sized for v7x
    # (64 MiB physical VMEM); v5e/v6e (128 MiB) get a bigger lane tile / cap.
    target, cap = 1024, 40 * 1024 * 1024
    try:
        info = pltpu.get_tpu_info()
        if info.vmem_capacity_bytes >= 100 * 1024 * 1024:
            target, cap = 2048, 96 * 1024 * 1024
    except Exception:
        pass
    return target, cap


def nlinear_kernel(x_ref, w_ref, b_ref, o_ref, *, mxu_dtype):
    # x_ref: (S, TC) f32 tile (lanes = channels of one batch element)
    # w_ref: (P, S)  resident weight (mxu_dtype)
    # b_ref: (P, 1)  f32 bias
    # o_ref: (P, TC) f32 output tile
    x = x_ref[...]                                   # (S, TC) f32
    last = x[-1:, :]                                 # (1, TC) last time step, f32
    xd = (x - last).astype(mxu_dtype)                # subtract BEFORE cast: de-trend numerics
    acc = jnp.dot(w_ref[...], xd,
                  preferred_element_type=jnp.float32)  # (P, TC) f32 accumulation on MXU
    o_ref[...] = (acc + b_ref[...] + last).astype(o_ref.dtype)


def nlinear_forward(x, weight, bias, *, block_c=None, mxu_dtype=jnp.bfloat16):
    """x: (B, S, C) f32. weight: (P, S). bias: (P,). Returns (B, P, C) f32."""
    B, S, C = x.shape
    P = weight.shape[0]
    target, vmem_cap = _generation_params()

    # ---- channel (lane) tile selection --------------------------------------
    if block_c is None:
        block_c = C if C <= target else target
        # Keep >=2 grid steps when B == 1 so both v7x TensorCores get work.
        if B == 1 and block_c == C and C >= 256:
            block_c = _round_up(pl.cdiv(C, 2), 128)
    else:
        if block_c >= C:
            block_c = C                              # full-dim block (always legal)
        else:
            block_c = _round_up(block_c, 128)        # partial blocks must be 128-aligned
            if block_c >= C:
                block_c = C

    c_steps = pl.cdiv(C, block_c)                    # ragged last block handled by Pallas
    grid = (B, c_steps)

    w = weight.astype(mxu_dtype)                     # resident weight (bf16 by default)
    b2 = bias.astype(jnp.float32).reshape(P, 1)      # (P, 1) f32 bias

    # ---- shape-aware VMEM limit ---------------------------------------------
    wb = jnp.dtype(mxu_dtype).itemsize
    block_bytes = (S * block_c * 4                   # x tile (f32)
                   + P * block_c * 4                 # out tile (f32)
                   + P * S * wb                      # weight
                   + _round_up(P, 8) * 128 * 4)      # bias (layout-padded)
    vmem_limit = max(16 * 1024 * 1024,
                     min(vmem_cap, 2 * block_bytes + 4 * 1024 * 1024))

    flops = 2 * B * P * S * C
    bytes_accessed = B * S * C * 4 + B * P * C * 4 + P * S * wb + P * 4

    out = pl.pallas_call(
        functools.partial(nlinear_kernel, mxu_dtype=mxu_dtype),
        out_shape=jax.ShapeDtypeStruct((B, P, C), x.dtype),
        grid_spec=pltpu.PrefetchScalarGridSpec(
            num_scalar_prefetch=0,
            grid=grid,
            in_specs=[
                pl.BlockSpec((None, S, block_c), lambda b, c: (b, 0, c)),  # x tile
                pl.BlockSpec((P, S), lambda b, c: (0, 0)),                 # resident weight
                pl.BlockSpec((P, 1), lambda b, c: (0, 0)),                 # bias
            ],
            out_specs=pl.BlockSpec((None, P, block_c), lambda b, c: (b, 0, c)),
        ),
        compiler_params=pltpu.CompilerParams(
            dimension_semantics=("parallel", "parallel"),
            vmem_limit_bytes=int(vmem_limit),
        ),
        cost_estimate=pl.CostEstimate(
            flops=int(flops), transcendentals=0,
            bytes_accessed=int(bytes_accessed)),
    )(x, w, b2)
    return out


def nlinear_reference(x, weight, bias):
    # Pure-JAX reference mirroring the PyTorch forward (f32 throughout).
    seq_last = x[:, -1:, :]                               # (B, 1, C)
    xc = x - seq_last                                     # (B, S, C)
    y = jnp.einsum("bsc,ps->bpc", xc, weight) + bias[None, :, None]
    return y + seq_last


if __name__ == "__main__":
    key = jax.random.PRNGKey(0)

    # --- test 1: small module-consistent shapes, exact f32 matmul path -------
    B, seq_len, pred_len, channels = 2, 8, 12, 4
    kx, kw, kb, kx2, kw2, kb2 = jax.random.split(key, 6)

    x = jax.random.normal(kx, (B, seq_len, channels), dtype=jnp.float32)
    bound = 1.0 / (seq_len ** 0.5)
    weight = jax.random.uniform(kw, (pred_len, seq_len), minval=-bound,
                                maxval=bound, dtype=jnp.float32)
    bias = jax.random.uniform(kb, (pred_len,), minval=-bound,
                              maxval=bound, dtype=jnp.float32)

    out_f32 = jax.block_until_ready(
        nlinear_forward(x, weight, bias, mxu_dtype=jnp.float32))
    ref = nlinear_reference(x, weight, bias)
    assert out_f32.shape == (B, pred_len, channels)
    assert jnp.allclose(out_f32, ref, atol=1e-4, rtol=1e-4), "mismatch (f32 path)"

    # --- test 1b: same shapes, default bf16 MXU path --------------------------
    out_bf = jax.block_until_ready(nlinear_forward(x, weight, bias))
    assert jnp.allclose(out_bf, ref, atol=5e-2, rtol=5e-2), "mismatch (bf16 path)"

    # --- test 2: channel tiling with ragged last block + multi-step grid -----
    B2, S2, P2, C2 = 2, 16, 24, 160      # block_c=128 -> grid (2, 2), last block ragged
    x_b = jax.random.normal(kx2, (B2, S2, C2), dtype=jnp.float32)
    bound2 = 1.0 / (S2 ** 0.5)
    w_b = jax.random.uniform(kw2, (P2, S2), minval=-bound2, maxval=bound2,
                             dtype=jnp.float32)
    b_b = jax.random.uniform(kb2, (P2,), minval=-bound2, maxval=bound2,
                             dtype=jnp.float32)

    out_b = jax.block_until_ready(nlinear_forward(x_b, w_b, b_b, block_c=128))
    ref_b = nlinear_reference(x_b, w_b, b_b)
    assert out_b.shape == (B2, P2, C2)
    assert jnp.allclose(out_b, ref_b, atol=5e-2, rtol=5e-2), "mismatch (tiled path)"

    print("KERNEL_OK")
</pallas_src>

<mosaic_0001>
module attributes {stable_mosaic.version = 11 : i64} {
  func.func @nlinear_kernel(%arg0: i32, %arg1: i32, %arg2: memref<1x8x4xf32, #tpu.memory_space<vmem>>, %arg3: memref<12x8xf32, #tpu.memory_space<vmem>>, %arg4: memref<12x1xf32, #tpu.memory_space<vmem>>, %arg5: memref<1x12x4xf32, #tpu.memory_space<vmem>>) attributes {dimension_semantics = [#tpu.dimension_semantics<parallel>, #tpu.dimension_semantics<parallel>], iteration_bounds = array<i64: 2, 1>, scalar_prefetch = 0 : i64, scratch_operands = 0 : i64, tpu.core_type = #tpu.core_type<tc>, window_params = [{transform_indices = @transform_0, window_bounds = array<i64: 1, 8, 4>}, {pipeline_mode = #tpu.pipeline_mode<synchronous>, transform_indices = @transform_1, window_bounds = array<i64: 12, 8>}, {pipeline_mode = #tpu.pipeline_mode<synchronous>, transform_indices = @transform_2, window_bounds = array<i64: 12, 1>}, {transform_indices = @transform_3, window_bounds = array<i64: 1, 12, 4>}]} {
    %c0 = arith.constant 0 : index
    %c0_0 = arith.constant 0 : index
    %c0_1 = arith.constant 0 : index
    %0 = vector.load %arg2[%c0, %c0_0, %c0_1] : memref<1x8x4xf32, #tpu.memory_space<vmem>>, vector<1x8x4xf32>
    %1 = vector.shape_cast %0 : vector<1x8x4xf32> to vector<8x4xf32>
    %2 = vector.extract_strided_slice %1 {offsets = [7, 0], sizes = [1, 4], strides = [1, 1]} : vector<8x4xf32> to vector<1x4xf32>
    %3 = vector.broadcast %2 : vector<1x4xf32> to vector<8x4xf32>
    %4 = arith.subf %1, %3 : vector<8x4xf32>
    %c0_2 = arith.constant 0 : index
    %c0_3 = arith.constant 0 : index
    %5 = vector.load %arg3[%c0_2, %c0_3] : memref<12x8xf32, #tpu.memory_space<vmem>>, vector<12x8xf32>
    %cst = arith.constant dense<0.000000e+00> : vector<12x4xf32>
    %6 = tpu.matmul %5, %4, %cst {dimension_numbers = #tpu.dot_dimension_numbers<[1], [0], [0], [1], [0, 0, 1, 1], [], []>} : vector<12x8xf32>, vector<8x4xf32>, vector<12x4xf32> -> vector<12x4xf32>
    %c0_4 = arith.constant 0 : index
    %c0_5 = arith.constant 0 : index
    %7 = vector.load %arg4[%c0_4, %c0_5] : memref<12x1xf32, #tpu.memory_space<vmem>>, vector<12x1xf32>
    %8 = vector.broadcast %7 : vector<12x1xf32> to vector<12x4xf32>
    %9 = arith.addf %6, %8 : vector<12x4xf32>
    %10 = vector.broadcast %2 : vector<1x4xf32> to vector<12x4xf32>
    %11 = arith.addf %9, %10 : vector<12x4xf32>
    %c0_6 = arith.constant 0 : index
    %c0_7 = arith.constant 0 : index
    %c0_8 = arith.constant 0 : index
    %12 = vector.load %arg5[%c0_6, %c0_7, %c0_8] : memref<1x12x4xf32, #tpu.memory_space<vmem>>, vector<1x12x4xf32>
    %13 = vector.shape_cast %12 : vector<1x12x4xf32> to vector<12x4xf32>
    %14 = vector.shape_cast %11 : vector<12x4xf32> to vector<1x12x4xf32>
    tpu.vector_store %arg5[%c0_6, %c0_7, %c0_8], %14 {strides = array<i32>} : memref<1x12x4xf32, #tpu.memory_space<vmem>>, vector<1x12x4xf32>,
    return
  }
  func.func @transform_0(%arg0: i32, %arg1: i32) -> (i32, i32, i32) {
    %c0_i32 = arith.constant 0 : i32
    %c0_i32_0 = arith.constant 0 : i32
    return %arg0, %c0_i32, %arg1 : i32, i32, i32
  }
  func.func @transform_1(%arg0: i32, %arg1: i32) -> (i32, i32) {
    %c0_i32 = arith.constant 0 : i32
    %c0_i32_0 = arith.constant 0 : i32
    %c0_i32_1 = arith.constant 0 : i32
    return %c0_i32, %c0_i32_0 : i32, i32
  }
  func.func @transform_2(%arg0: i32, %arg1: i32) -> (i32, i32) {
    %c0_i32 = arith.constant 0 : i32
    %c0_i32_0 = arith.constant 0 : i32
    %c0_i32_1 = arith.constant 0 : i32
    return %c0_i32, %c0_i32_0 : i32, i32
  }
  func.func @transform_3(%arg0: i32, %arg1: i32) -> (i32, i32, i32) {
    %c0_i32 = arith.constant 0 : i32
    %c0_i32_0 = arith.constant 0 : i32
    return %arg0, %c0_i32, %arg1 : i32, i32, i32
  }
}

</mosaic_0001>

<bundles_post_ra>
// kernel: tpu_custom_call.1
= control target key start
LH: loop header
LB: loop body
LE: loop exit
PB: predicated region body
PF: predicated region fallthrough
CT: control target
= control target key end

     0   :  { %s479_s12 = smov 0   ;;  %s481_s13 = smov 0   ;;  %s526_s0 = inlined_call_operand.vmem [shape: f32[2,8,4], index: 0, kind: input, shape index: {}]   ;;  %s527_s1 = inlined_call_operand.vmem [shape: f32[12,8], index: 1, kind: input, shape index: {}]   ;;  %s528_s2 = inlined_call_operand.vmem [shape: f32[12,1], index: 2, kind: input, shape index: {}]   ;;  %s529_s3 = inlined_call_operand.vmem [shape: f32[2,12,4], index: 3, kind: output, shape index: {}]  }
   0x1   :  { %s483_s14 = smov 0  }
   0x2 LB: > { %s25_s15 = sadd.s32 1, %s452_s13  ;;  %p391_p0 = scmp.ge.s32.totalorder %s456_s14, 1  ;;  %s456_s14 = sphi %s483_s14, %s13_s14   ;;  %s452_s13 = sphi %s481_s13, %s531_s13   ;;  %s448_s12 = sphi %s479_s12, %s530_s12  }
   0x3   : > { %p27_p1 = scmp.ge.s32.totalorder %s25_s15, 2  ;;  %p155_p2 = scmp.lt.s32.totalorder %s456_s14, 3 }
   0x5   : > { %s533_s15 = smov (%p27_p1, %s25_s15), 0  ;;  %p156_p3 = pnand %p391_p0, %p155_p2 }
   0x6   : > { %p184_p4 = scmp.lt.s32.totalorder (!%p156_p3), %s448_s12, 1 }
   0x7   : > { %159 = sbr.rel (%p156_p3) target bundleno = 224 (0xe0), region = 32 }
   0xc   : > { %v200_v0 = vlaneseq  ;;  %v205_v1 = vld [vmem:[%s527_s1] sm:$0xff]  ;;  %vm219_vm0 = vcmask 64512   ;;  %v458_v2 = vmov 0   ;;  %s535_s12 = smov (!%p184_p4, %s448_s12), 1  ;;  %v208_v5 = vld [vmem:[%s528_s2 + $0x8] sm:$0xf] }
   0xd   : > { %405 = vmatprep.mubr.msk.f32.mxu0 %vm219_vm0, %v205_v1  ;;  %433 = vset.pattern.permute.xlu0 %v458_v2  ;;  %v207_v3 = vld [vmem:[%s528_s2] sm:$0xff]  ;;  %s392_s22 = sshll.u32 %s535_s12, 3  ;;  %v206_v10 = vld [vmem:[%s527_s1 + $0x8] sm:$0xf]  ;;  %s399_s28 = sshll.u32 %s535_s12, 4  ;;  %vm305_vm1 = vcmask 27648  }
   0xe   : > { %v201_v4 = vshrl.u32 %v200_v0, 7  ;;  %211 = vperm.xlu0 %433, %v207_v3   ;;  %s190_s25 = scalar_lea.vmem %s526_s0, %s392_s22  ;;  %s198_s4 = scalar_lea.vmem %s529_s3, %s399_s28  ;;  %vm303_vm2 = vcmask 31744  }
   0xf   : > { %v199_v7 = vld [vmem:[%s190_s25] sm:$0xff] }
  0x10   : > { %v202_v6 = vsub.s32 7, %v201_v4 }
  0x12   : > { %216 = vperm.xlu0 %433, %v208_v5   ;;  %v203_v8 = vrot.slane %v199_v7, %v202_v6 }
  0x14   : > { %v204_v9 = vsub.f32 %v199_v7, %v203_v8 }
  0x16   : > { %403 = vmatprep.subr.mxu0 %v204_v9 }
  0x17   : > { %404 = vmatpush3.msra.mxu0 %v204_v9 }
  0x18   : > { %406 = vmatmul.mubr.msk.f32.vlgmr.msra.gmra.mxu0 %vm219_vm0, %v206_v10 }
  0x89   : > { %v212_v11 = vpop.permute.xlu0 %211 }
  0x8d   : > { %v217_v12 = vpop.permute.xlu0 %216 }
  0xd8   : > { %v407_v13 = vpop.f32.mrf.mxu0 }
  0xd9   : > { %v298_v14 = vadd.f32 %v407_v13, %v217_v12 }
  0xda   : > { %v292_v15 = vpop.f32.mrf.mxu0 }
  0xdb   : > { %v302_v16 = vadd.f32 %v298_v14, %v203_v8  ;;  %v293_v17 = vadd.f32 %v292_v15, %v212_v11 }
  0xdd   : > { %306 = vst.msk [vmem:[%s198_s4 + $0x8] sm:$0xf] %vm305_vm1, %v302_v16  ;;  %v301_v18 = vadd.f32 %v293_v17, %v203_v8 }
  0xdf   : > { %304 = vst.msk [vmem:[%s198_s4] sm:$0xff] %vm303_vm2, %v301_v18 }
  0xe0 PF: > { %s13_s14 = sadd.s32 1, %s456_s14   ;;  %s530_s12 = smov %s452_s13 }
  0xe1   : > { %p10_p5 = scmp.ge.s32.totalorder %s13_s14, 4   ;;  %s531_s13 = smov %s533_s15 }
  0xe3   :  { %12 = sbr.rel (!%p10_p5) target bundleno = 2 (0x2), region = 62 }

</bundles_post_ra>
